<compile_context>
chip_gen: v7x
topology: tpu7x:2x2x1
jax: 0.10.0
libtpu: 0.0.40
codegen_flags: <defaults>
</compile_context>

<pallas_src>
import jax
import jax.numpy as jnp
from jax.experimental import pallas as pl
from jax.experimental.pallas import tpu as pltpu

IN_DIM = 3
OUT_DIM = 7
OUT_PAD = 128   # lane-dense padded output width


def _round_up(n, m):
    return ((n + m - 1) // m) * m


# ---------------------------------------------------------------------------
# Kernel: one batch tile of TM rows.
#   h1 = relu(x @ W1 + b1)    K=3 -> three VPU FMAs (f32), MXU untouched
#   h2 = relu(h1 @ W2 + b2)   bf16 MXU, f32 accumulate
#   h3 = relu(h2 @ W3 + b3)   bf16 MXU, f32 accumulate
#   y  = h3 @ W4 + b4         bf16 MXU, f32 accumulate
# ---------------------------------------------------------------------------
def mlp_kernel(x_ref, w1_ref, b1_ref, w2_ref, b2_ref,
               w3_ref, b3_ref, w4_ref, b4_ref, o_ref):
    x = x_ref[...]      # (TM, 3)  f32
    w1 = w1_ref[...]    # (3, 128) f32

    # fc1 as 3 broadcasted outer-product FMAs (VALU slot; free next to the MXU).
    h1 = (x[:, 0:1] * w1[0:1, :]
          + x[:, 1:2] * w1[1:2, :]
          + x[:, 2:3] * w1[2:3, :]
          + b1_ref[...])
    h1 = jnp.maximum(h1, 0.0)

    h2 = jnp.dot(h1.astype(jnp.bfloat16), w2_ref[...],
                 preferred_element_type=jnp.float32) + b2_ref[...]
    h2 = jnp.maximum(h2, 0.0)

    h3 = jnp.dot(h2.astype(jnp.bfloat16), w3_ref[...],
                 preferred_element_type=jnp.float32) + b3_ref[...]
    h3 = jnp.maximum(h3, 0.0)

    y = jnp.dot(h3.astype(jnp.bfloat16), w4_ref[...],
                preferred_element_type=jnp.float32) + b4_ref[...]
    o_ref[...] = y


# ---------------------------------------------------------------------------
# One-time parameter packing (NOT on the per-call path).
# ---------------------------------------------------------------------------
def prepare_params(params):
    w1, b1 = params["fc1"]
    w2, b2 = params["fc2"]
    w3, b3 = params["fc3"]
    w4, b4 = params["fc4"]

    # Pad fc4 output 7 -> 128 lanes (zero columns are exact / harmless).
    w4p = jnp.zeros((128, OUT_PAD), jnp.float32).at[:, :OUT_DIM].set(w4)
    b4p = jnp.zeros((1, OUT_PAD), jnp.float32).at[:, :OUT_DIM].set(b4.reshape(1, -1))

    return dict(
        w1=w1.astype(jnp.float32),                  # (3, 128)   f32 (VPU path)
        b1=b1.reshape(1, -1).astype(jnp.float32),   # (1, 128)
        w2=w2.astype(jnp.bfloat16),                 # (128, 256) bf16 (MXU)
        b2=b2.reshape(1, -1).astype(jnp.float32),   # (1, 256)
        w3=w3.astype(jnp.bfloat16),                 # (256, 128)
        b3=b3.reshape(1, -1).astype(jnp.float32),   # (1, 128)
        w4=w4p.astype(jnp.bfloat16),                # (128, 128)
        b4=b4p,                                     # (1, 128)   f32
    )


# ---------------------------------------------------------------------------
# Forward wrapper: pad batch, run fused kernel over a parallel batch grid.
# ---------------------------------------------------------------------------
@jax.jit
def imitation_learning_forward(x, prepped):
    """x: (B, 3) float32.  prepped: output of prepare_params()."""
    B = x.shape[0]
    TM = min(128, _round_up(max(B, 1), 8))     # rows per grid step (sublane aligned)
    B_PAD = _round_up(max(B, 1), TM)
    grid = (B_PAD // TM,)

    x_pad = jnp.pad(x.astype(jnp.float32), ((0, B_PAD - B), (0, 0)))

    fixed = lambda i: (0, 0)   # same block every step -> weights stay VMEM-resident

    out_pad = pl.pallas_call(
        mlp_kernel,
        out_shape=jax.ShapeDtypeStruct((B_PAD, OUT_PAD), jnp.float32),
        grid=grid,
        in_specs=[
            pl.BlockSpec((TM, IN_DIM), lambda i: (i, 0)),   # x batch tile
            pl.BlockSpec((IN_DIM, 128), fixed),             # w1
            pl.BlockSpec((1, 128), fixed),                  # b1
            pl.BlockSpec((128, 256), fixed),                # w2
            pl.BlockSpec((1, 256), fixed),                  # b2
            pl.BlockSpec((256, 128), fixed),                # w3
            pl.BlockSpec((1, 128), fixed),                  # b3
            pl.BlockSpec((128, OUT_PAD), fixed),            # w4 (padded)
            pl.BlockSpec((1, OUT_PAD), fixed),              # b4 (padded)
        ],
        out_specs=pl.BlockSpec((TM, OUT_PAD), lambda i: (i, 0)),
        compiler_params=pltpu.CompilerParams(
            dimension_semantics=("parallel",)),   # batch tiles shard across TCs (v7x)
    )(x_pad, prepped["w1"], prepped["b1"], prepped["w2"], prepped["b2"],
      prepped["w3"], prepped["b3"], prepped["w4"], prepped["b4"])

    return out_pad[:B, :OUT_DIM]


# ---------------------------------------------------------------------------
# Deterministic init (weights stored (in, out), i.e. nn.Linear.weight transposed)
# and pure-JAX references.
# ---------------------------------------------------------------------------
def init_params(key):
    sizes = [("fc1", 3, 128), ("fc2", 128, 256), ("fc3", 256, 128), ("fc4", 128, 7)]
    params = {}
    for name, fan_in, fan_out in sizes:
        key, kw, kb = jax.random.split(key, 3)
        bound = 1.0 / jnp.sqrt(fan_in)   # nn.Linear default scheme
        w = jax.random.uniform(kw, (fan_in, fan_out), jnp.float32, -bound, bound)
        b = jax.random.uniform(kb, (fan_out,), jnp.float32, -bound, bound)
        params[name] = (w, b)
    return params


def reference_forward_f32(x, params):
    h = x
    for name in ("fc1", "fc2", "fc3"):
        w, b = params[name]
        h = jnp.maximum(h @ w + b, 0.0)
    w, b = params["fc4"]
    return h @ w + b


def reference_forward_bf16(x, params):
    """Precision-matched reference: f32 fc1; bf16 MXU inputs, f32 accum for fc2-4."""
    w1, b1 = params["fc1"]
    h = jnp.maximum(x @ w1 + b1, 0.0)
    for name in ("fc2", "fc3"):
        w, b = params[name]
        h = jnp.dot(h.astype(jnp.bfloat16), w.astype(jnp.bfloat16),
                    preferred_element_type=jnp.float32) + b
        h = jnp.maximum(h, 0.0)
    w, b = params["fc4"]
    return jnp.dot(h.astype(jnp.bfloat16), w.astype(jnp.bfloat16),
                   preferred_element_type=jnp.float32) + b


if __name__ == "__main__":
    key = jax.random.PRNGKey(0)
    params = init_params(key)
    prepped = prepare_params(params)        # one-time packing, off the hot path

    # Small batch of 3-dim observations.
    x = jax.random.normal(jax.random.PRNGKey(1), (2, 3), jnp.float32)
    out = jax.block_until_ready(imitation_learning_forward(x, prepped))
    assert out.shape == (2, OUT_DIM), out.shape

    # Tight check vs precision-matched (bf16-matmul) reference.
    ref_bf16 = reference_forward_bf16(x, params)
    assert jnp.allclose(out, ref_bf16, atol=2e-3, rtol=2e-3), "mismatch vs bf16 ref"
    # Loose sanity check vs full-f32 reference (bf16 matmul rounding only).
    ref_f32 = reference_forward_f32(x, params)
    assert jnp.allclose(out, ref_f32, atol=3e-2, rtol=3e-2), "mismatch vs f32 ref"

    # Larger batch exercises the multi-tile parallel grid (TM=128, padded remainder).
    x_big = jax.random.normal(jax.random.PRNGKey(2), (300, 3), jnp.float32)
    out_big = jax.block_until_ready(imitation_learning_forward(x_big, prepped))
    assert out_big.shape == (300, OUT_DIM), out_big.shape
    ref_big = reference_forward_bf16(x_big, params)
    assert jnp.allclose(out_big, ref_big, atol=2e-3, rtol=2e-3), "mismatch (big batch)"

    print("KERNEL_OK")
</pallas_src>

<mosaic_0001>
module attributes {stable_mosaic.version = 11 : i64} {
  func.func @mlp_kernel(%arg0: i32, %arg1: memref<8x3xf32, #tpu.memory_space<vmem>>, %arg2: memref<3x128xf32, #tpu.memory_space<vmem>>, %arg3: memref<1x128xf32, #tpu.memory_space<vmem>>, %arg4: memref<128x256xbf16, #tpu.memory_space<vmem>>, %arg5: memref<1x256xf32, #tpu.memory_space<vmem>>, %arg6: memref<256x128xbf16, #tpu.memory_space<vmem>>, %arg7: memref<1x128xf32, #tpu.memory_space<vmem>>, %arg8: memref<128x128xbf16, #tpu.memory_space<vmem>>, %arg9: memref<1x128xf32, #tpu.memory_space<vmem>>, %arg10: memref<8x128xf32, #tpu.memory_space<vmem>>) attributes {dimension_semantics = [#tpu.dimension_semantics<parallel>], iteration_bounds = array<i64: 1>, scalar_prefetch = 0 : i64, scratch_operands = 0 : i64, tpu.core_type = #tpu.core_type<tc>, window_params = [{transform_indices = @transform_0, window_bounds = array<i64: 8, 3>}, {pipeline_mode = #tpu.pipeline_mode<synchronous>, transform_indices = @transform_1, window_bounds = array<i64: 3, 128>}, {pipeline_mode = #tpu.pipeline_mode<synchronous>, transform_indices = @transform_2, window_bounds = array<i64: 1, 128>}, {pipeline_mode = #tpu.pipeline_mode<synchronous>, transform_indices = @transform_3, window_bounds = array<i64: 128, 256>}, {pipeline_mode = #tpu.pipeline_mode<synchronous>, transform_indices = @transform_4, window_bounds = array<i64: 1, 256>}, {pipeline_mode = #tpu.pipeline_mode<synchronous>, transform_indices = @transform_5, window_bounds = array<i64: 256, 128>}, {pipeline_mode = #tpu.pipeline_mode<synchronous>, transform_indices = @transform_6, window_bounds = array<i64: 1, 128>}, {pipeline_mode = #tpu.pipeline_mode<synchronous>, transform_indices = @transform_7, window_bounds = array<i64: 128, 128>}, {pipeline_mode = #tpu.pipeline_mode<synchronous>, transform_indices = @transform_8, window_bounds = array<i64: 1, 128>}, {transform_indices = @transform_9, window_bounds = array<i64: 8, 128>}]} {
    %c0 = arith.constant 0 : index
    %c0_0 = arith.constant 0 : index
    %0 = vector.load %arg1[%c0, %c0_0] : memref<8x3xf32, #tpu.memory_space<vmem>>, vector<8x3xf32>
    %c0_1 = arith.constant 0 : index
    %c0_2 = arith.constant 0 : index
    %1 = vector.load %arg2[%c0_1, %c0_2] : memref<3x128xf32, #tpu.memory_space<vmem>>, vector<3x128xf32>
    %2 = vector.extract_strided_slice %0 {offsets = [0, 0], sizes = [8, 1], strides = [1, 1]} : vector<8x3xf32> to vector<8x1xf32>
    %3 = vector.extract_strided_slice %1 {offsets = [0, 0], sizes = [1, 128], strides = [1, 1]} : vector<3x128xf32> to vector<1x128xf32>
    %4 = vector.broadcast %2 : vector<8x1xf32> to vector<8x128xf32>
    %5 = vector.broadcast %3 : vector<1x128xf32> to vector<8x128xf32>
    %6 = arith.mulf %4, %5 : vector<8x128xf32>
    %7 = vector.extract_strided_slice %0 {offsets = [0, 1], sizes = [8, 1], strides = [1, 1]} : vector<8x3xf32> to vector<8x1xf32>
    %8 = vector.extract_strided_slice %1 {offsets = [1, 0], sizes = [1, 128], strides = [1, 1]} : vector<3x128xf32> to vector<1x128xf32>
    %9 = vector.broadcast %7 : vector<8x1xf32> to vector<8x128xf32>
    %10 = vector.broadcast %8 : vector<1x128xf32> to vector<8x128xf32>
    %11 = arith.mulf %9, %10 : vector<8x128xf32>
    %12 = arith.addf %6, %11 : vector<8x128xf32>
    %13 = vector.extract_strided_slice %0 {offsets = [0, 2], sizes = [8, 1], strides = [1, 1]} : vector<8x3xf32> to vector<8x1xf32>
    %14 = vector.extract_strided_slice %1 {offsets = [2, 0], sizes = [1, 128], strides = [1, 1]} : vector<3x128xf32> to vector<1x128xf32>
    %15 = vector.broadcast %13 : vector<8x1xf32> to vector<8x128xf32>
    %16 = vector.broadcast %14 : vector<1x128xf32> to vector<8x128xf32>
    %17 = arith.mulf %15, %16 : vector<8x128xf32>
    %18 = arith.addf %12, %17 : vector<8x128xf32>
    %c0_3 = arith.constant 0 : index
    %c0_4 = arith.constant 0 : index
    %19 = vector.load %arg3[%c0_3, %c0_4] : memref<1x128xf32, #tpu.memory_space<vmem>>, vector<1x128xf32>
    %20 = vector.broadcast %19 : vector<1x128xf32> to vector<8x128xf32>
    %21 = arith.addf %18, %20 : vector<8x128xf32>
    %cst = arith.constant 0.000000e+00 : f32
    %22 = vector.broadcast %cst : f32 to vector<8x128xf32>
    %23 = arith.maximumf %21, %22 : vector<8x128xf32>
    %24 = arith.truncf %23 : vector<8x128xf32> to vector<8x128xbf16>
    %c0_5 = arith.constant 0 : index
    %c0_6 = arith.constant 0 : index
    %25 = vector.load %arg4[%c0_5, %c0_6] : memref<128x256xbf16, #tpu.memory_space<vmem>>, vector<128x256xbf16>
    %cst_7 = arith.constant dense<0.000000e+00> : vector<8x256xf32>
    %26 = tpu.matmul %24, %25, %cst_7 {dimension_numbers = #tpu.dot_dimension_numbers<[1], [0], [0], [1], [0, 0, 1, 1], [], []>} : vector<8x128xbf16>, vector<128x256xbf16>, vector<8x256xf32> -> vector<8x256xf32>
    %c0_8 = arith.constant 0 : index
    %c0_9 = arith.constant 0 : index
    %27 = vector.load %arg5[%c0_8, %c0_9] : memref<1x256xf32, #tpu.memory_space<vmem>>, vector<1x256xf32>
    %28 = vector.broadcast %27 : vector<1x256xf32> to vector<8x256xf32>
    %29 = arith.addf %26, %28 : vector<8x256xf32>
    %cst_10 = arith.constant 0.000000e+00 : f32
    %30 = vector.broadcast %cst_10 : f32 to vector<8x256xf32>
    %31 = arith.maximumf %29, %30 : vector<8x256xf32>
    %32 = arith.truncf %31 : vector<8x256xf32> to vector<8x256xbf16>
    %c0_11 = arith.constant 0 : index
    %c0_12 = arith.constant 0 : index
    %33 = vector.load %arg6[%c0_11, %c0_12] : memref<256x128xbf16, #tpu.memory_space<vmem>>, vector<256x128xbf16>
    %cst_13 = arith.constant dense<0.000000e+00> : vector<8x128xf32>
    %34 = tpu.matmul %32, %33, %cst_13 {dimension_numbers = #tpu.dot_dimension_numbers<[1], [0], [0], [1], [0, 0, 1, 1], [], []>} : vector<8x256xbf16>, vector<256x128xbf16>, vector<8x128xf32> -> vector<8x128xf32>
    %c0_14 = arith.constant 0 : index
    %c0_15 = arith.constant 0 : index
    %35 = vector.load %arg7[%c0_14, %c0_15] : memref<1x128xf32, #tpu.memory_space<vmem>>, vector<1x128xf32>
    %36 = vector.broadcast %35 : vector<1x128xf32> to vector<8x128xf32>
    %37 = arith.addf %34, %36 : vector<8x128xf32>
    %cst_16 = arith.constant 0.000000e+00 : f32
    %38 = vector.broadcast %cst_16 : f32 to vector<8x128xf32>
    %39 = arith.maximumf %37, %38 : vector<8x128xf32>
    %40 = arith.truncf %39 : vector<8x128xf32> to vector<8x128xbf16>
    %c0_17 = arith.constant 0 : index
    %c0_18 = arith.constant 0 : index
    %41 = vector.load %arg8[%c0_17, %c0_18] : memref<128x128xbf16, #tpu.memory_space<vmem>>, vector<128x128xbf16>
    %cst_19 = arith.constant dense<0.000000e+00> : vector<8x128xf32>
    %42 = tpu.matmul %40, %41, %cst_19 {dimension_numbers = #tpu.dot_dimension_numbers<[1], [0], [0], [1], [0, 0, 1, 1], [], []>} : vector<8x128xbf16>, vector<128x128xbf16>, vector<8x128xf32> -> vector<8x128xf32>
    %c0_20 = arith.constant 0 : index
    %c0_21 = arith.constant 0 : index
    %43 = vector.load %arg9[%c0_20, %c0_21] : memref<1x128xf32, #tpu.memory_space<vmem>>, vector<1x128xf32>
    %44 = vector.broadcast %43 : vector<1x128xf32> to vector<8x128xf32>
    %45 = arith.addf %42, %44 : vector<8x128xf32>
    %c0_22 = arith.constant 0 : index
    %c0_23 = arith.constant 0 : index
    %46 = vector.load %arg10[%c0_22, %c0_23] : memref<8x128xf32, #tpu.memory_space<vmem>>, vector<8x128xf32>
    tpu.vector_store %arg10[%c0_22, %c0_23], %45 {strides = array<i32>} : memref<8x128xf32, #tpu.memory_space<vmem>>, vector<8x128xf32>,
    return
  }
  func.func @transform_0(%arg0: i32) -> (i32, i32) {
    %c0_i32 = arith.constant 0 : i32
    %c0_i32_0 = arith.constant 0 : i32
    return %arg0, %c0_i32 : i32, i32
  }
  func.func @transform_1(%arg0: i32) -> (i32, i32) {
    %c0_i32 = arith.constant 0 : i32
    %c0_i32_0 = arith.constant 0 : i32
    %c0_i32_1 = arith.constant 0 : i32
    return %c0_i32, %c0_i32_0 : i32, i32
  }
  func.func @transform_2(%arg0: i32) -> (i32, i32) {
    %c0_i32 = arith.constant 0 : i32
    %c0_i32_0 = arith.constant 0 : i32
    %c0_i32_1 = arith.constant 0 : i32
    return %c0_i32, %c0_i32_0 : i32, i32
  }
  func.func @transform_3(%arg0: i32) -> (i32, i32) {
    %c0_i32 = arith.constant 0 : i32
    %c0_i32_0 = arith.constant 0 : i32
    %c0_i32_1 = arith.constant 0 : i32
    return %c0_i32, %c0_i32_0 : i32, i32
  }
  func.func @transform_4(%arg0: i32) -> (i32, i32) {
    %c0_i32 = arith.constant 0 : i32
    %c0_i32_0 = arith.constant 0 : i32
    %c0_i32_1 = arith.constant 0 : i32
    return %c0_i32, %c0_i32_0 : i32, i32
  }
  func.func @transform_5(%arg0: i32) -> (i32, i32) {
    %c0_i32 = arith.constant 0 : i32
    %c0_i32_0 = arith.constant 0 : i32
    %c0_i32_1 = arith.constant 0 : i32
    return %c0_i32, %c0_i32_0 : i32, i32
  }
  func.func @transform_6(%arg0: i32) -> (i32, i32) {
    %c0_i32 = arith.constant 0 : i32
    %c0_i32_0 = arith.constant 0 : i32
    %c0_i32_1 = arith.constant 0 : i32
    return %c0_i32, %c0_i32_0 : i32, i32
  }
  func.func @transform_7(%arg0: i32) -> (i32, i32) {
    %c0_i32 = arith.constant 0 : i32
    %c0_i32_0 = arith.constant 0 : i32
    %c0_i32_1 = arith.constant 0 : i32
    return %c0_i32, %c0_i32_0 : i32, i32
  }
  func.func @transform_8(%arg0: i32) -> (i32, i32) {
    %c0_i32 = arith.constant 0 : i32
    %c0_i32_0 = arith.constant 0 : i32
    %c0_i32_1 = arith.constant 0 : i32
    return %c0_i32, %c0_i32_0 : i32, i32
  }
  func.func @transform_9(%arg0: i32) -> (i32, i32) {
    %c0_i32 = arith.constant 0 : i32
    %c0_i32_0 = arith.constant 0 : i32
    return %arg0, %c0_i32 : i32, i32
  }
}

</mosaic_0001>

<bundles_post_ra>
// kernel: imitation_learning_forward.1
= control target key start
LH: loop header
LB: loop body
LE: loop exit
PB: predicated region body
PF: predicated region fallthrough
CT: control target
= control target key end

     0   :  { %14 = vsyncpa [#allocation3], 0  ;;  %s917_s0 = inlined_call_operand.vmem [shape: f32[8,3], index: 0, kind: input, shape index: {}]   ;;  %s918_s1 = inlined_call_operand.vmem [shape: f32[3,128], index: 1, kind: input, shape index: {}]   ;;  %s919_s2 = inlined_call_operand.vmem [shape: f32[1,128], index: 2, kind: input, shape index: {}]   ;;  %s920_s3 = inlined_call_operand.hbm [shape: bf16[128,256], index: 3, kind: input, shape index: {}]   ;;  %s921_s4 = inlined_call_operand.vmem [shape: f32[1,256], index: 4, kind: input, shape index: {}]   ;;  %s922_s5 = inlined_call_operand.hbm [shape: bf16[256,128], index: 5, kind: input, shape index: {}]   ;;  %s923_s6 = inlined_call_operand.vmem [shape: f32[1,128], index: 6, kind: input, shape index: {}]   ;;  %s924_s7 = inlined_call_operand.hbm [shape: bf16[128,128], index: 7, kind: input, shape index: {}]   ;;  %s925_s8 = inlined_call_operand.vmem [shape: f32[1,128], index: 8, kind: input, shape index: {}]   ;;  %s926_s9 = inlined_call_operand.vmem [shape: f32[8,128], index: 9, kind: output, shape index: {}]  }
   0x1   :  { %15 = vsyncpa [#allocation5], 0  ;;  %s792_s30 = smov [#allocation4]   ;;  %s722_s13 = scalar_lea.hbm %s922_s5, 2048 }
   0x2   :  { %s41_s10 = sshll.u32 %s792_s30, 4  ;;  %p723_p0 = scmp.ne.s32.totalorder %s922_s5, %s722_s13  ;;  %s42_s10 = int_to_ptr.vmem [resolvable:$true] %s41_s10 }
   0x3   :  { %p726_p1 = scmp.lt.u32.totalorder %s722_s13, %s922_s5 }
   0x5   :  { %p728_p2 = pnand %p726_p1, %p723_p0 }
   0x7   :  { %731 = shalt.err (!%p728_p2)
}
   0x8   :  { %s732_s18 = scalar_lea.vmem %s42_s10, 2048  ;;  %p737_p4 = scmp.lt.s32.totalorder %s42_s10, %s42_s10 }
   0x9   :  { %p733_p3 = scmp.ne.s32.totalorder %s42_s10, %s732_s18  ;;  %p738_p5 = scmp.lt.s32.totalorder %s732_s18, %s732_s18 }
   0xb   :  { %p739_p6 = por %p738_p5, %p737_p4 }
   0xd   :  { %p740_p7 = pnand %p739_p6, %p733_p3 }
   0xf   :  { %743 = shalt.err (!%p740_p7)
}
  0x10   :  { %s793_s19 = smov 64   ;;  %s794_s20 = smov 4  }
  0x11   :  { %47 = dma.hbm_to_vmem [thread:$0]  %s922_s5, 2048, %s42_s10, [#allocation5], %s793_s19, %s793_s19, %s794_s20  }
  0x12   :  { %s795_s23 = smov [#allocation2]   ;;  %s744_s27 = scalar_lea.hbm %s920_s3, 2048 }
  0x13   :  { %s27_s24 = sshll.u32 %s795_s23, 4  ;;  %p745_p8 = scmp.ne.s32.totalorder %s920_s3, %s744_s27  ;;  %s28_s24 = int_to_ptr.vmem [resolvable:$true] %s27_s24 }
  0x14   :  { %p748_p9 = scmp.lt.u32.totalorder %s744_s27, %s920_s3 }
  0x16   :  { %p750_p10 = pnand %p748_p9, %p745_p8 }
  0x18   :  { %753 = shalt.err (!%p750_p10)
}
  0x19   :  { %s754_s12 = scalar_lea.vmem %s28_s24, 2048  ;;  %p759_p12 = scmp.lt.s32.totalorder %s28_s24, %s28_s24 }
  0x1a   :  { %p755_p11 = scmp.ne.s32.totalorder %s28_s24, %s754_s12  ;;  %p760_p13 = scmp.lt.s32.totalorder %s754_s12, %s754_s12 }
  0x1c   :  { %p761_p0 = por %p760_p13, %p759_p12 }
  0x1e   :  { %p762_p1 = pnand %p761_p0, %p755_p11 }
  0x20   :  { %765 = shalt.err (!%p762_p1)
}
  0x21   :  { %s796_s5 = smov 128   ;;  %s797_s10 = smov 8  }
  0x22   :  { %33 = dma.hbm_to_vmem [thread:$0]  %s920_s3, 2048, %s28_s24, [#allocation3], %s796_s5, %s796_s5, %s797_s10  }
  0x23   :  { %s798_s15 = smov [#allocation6]   ;;  %s766_s21 = scalar_lea.hbm %s924_s7, 1024 }
  0x24   :  { %s55_s16 = sshll.u32 %s798_s15, 4  ;;  %p767_p2 = scmp.ne.s32.totalorder %s924_s7, %s766_s21  ;;  %s56_s16 = int_to_ptr.vmem [resolvable:$true] %s55_s16 }
  0x25   :  { %p770_p3 = scmp.lt.u32.totalorder %s766_s21, %s924_s7 }
  0x27   :  { %p772_p4 = pnand %p770_p3, %p767_p2 }
  0x29   :  { %775 = shalt.err (!%p772_p4)
}
  0x2a   :  { %s776_s27 = scalar_lea.vmem %s56_s16, 1024  ;;  %p781_p6 = scmp.lt.s32.totalorder %s56_s16, %s56_s16 }
  0x2b   :  { %p777_p5 = scmp.ne.s32.totalorder %s56_s16, %s776_s27  ;;  %p782_p7 = scmp.lt.s32.totalorder %s776_s27, %s776_s27 }
  0x2d   :  { %p783_p8 = por %p782_p7, %p781_p6 }
  0x2f   :  { %p784_p9 = pnand %p783_p8, %p777_p5 }
  0x31   :  { %787 = shalt.err (!%p784_p9)
}
  0x32   :  { %61 = dma.hbm_to_vmem [thread:$0]  %s924_s7, 1024, %s56_s16, [#allocation5], %s793_s19, %s793_s19, %s794_s20  }
  0x33   :  { %788 = dma.done.wait [#allocation3], 2048  }
  0x34   :  { %789 = vsyncadd [#allocation3], 4294965248 }
  0x35   :  { %790 = dma.done.wait [#allocation5], 3072  }
  0x36   :  { %791 = vsyncadd [#allocation5], 4294964224  ;;  %v799_v0 = vmov 0   ;;  %v800_v1 = vmov 2   ;;  %v74_v2 = vld [vmem:[%s917_s0] sm:$0xff]  ;;  %v801_v7 = vmov 1   ;;  %v81_v32 = vlaneseq }
  0x37   :  { %670 = vset.pattern.permute.xlu0 %v799_v0  ;;  %672 = vset.pattern.permute.xlu1 %v800_v1  ;;  %v674_v3 = vld [vmem:[#allocation2 + $0x4] ss:$8 sps:$4 sm:$0xff]   ;;  %v676_v4 = vld [vmem:[#allocation2] ss:$8 sps:$4 sm:$0xff]   ;;  %v677_v5 = vld [vmem:[#allocation2 + $0x14] ss:$8 sps:$4 sm:$0xff]  }
  0x38   :  { %256 = vmatprep.mubr.bf16.mxu0 %v799_v0  ;;  %78 = vperm.xlu0 %670, %v74_v2   ;;  %v679_v6 = vld [vmem:[#allocation2 + $0x10] ss:$8 sps:$4 sm:$0xff]   ;;  %v680_v8 = vld [vmem:[#allocation2 + $0x24] ss:$8 sps:$4 sm:$0xff]   ;;  %v682_v9 = vld [vmem:[#allocation2 + $0x20] ss:$8 sps:$4 sm:$0xff]  }
  0x39   :  { %97 = vperm.xlu1 %672, %v74_v2   ;;  %224 = vmatprep.subr.bf16.mxu0 %v674_v3  ;;  %v683_v10 = vld [vmem:[#allocation2 + $0x34] ss:$8 sps:$4 sm:$0xff]   ;;  %v685_v11 = vld [vmem:[#allocation2 + $0x30] ss:$8 sps:$4 sm:$0xff]   ;;  %v686_v12 = vld [vmem:[#allocation2 + $0x44] ss:$8 sps:$4 sm:$0xff]  }
  0x3a   :  { %225 = vmatpush1.bf16.msra.mxu0 %v676_v4  ;;  %v688_v13 = vld [vmem:[#allocation2 + $0x40] ss:$8 sps:$4 sm:$0xff]   ;;  %v689_v14 = vld [vmem:[#allocation2 + $0x54] ss:$8 sps:$4 sm:$0xff]   ;;  %v691_v18 = vld [vmem:[#allocation2 + $0x50] ss:$8 sps:$4 sm:$0xff]  }
  0x3b   :  { %226 = vmatprep.subr.bf16.mxu0 %v677_v5  ;;  %v698_v15 = vld [vmem:[#allocation4 + $0x40] sm:$0xff]   ;;  %v700_v17 = vld [vmem:[#allocation4 + $0x48] sm:$0xff]   ;;  %v702_v22 = vld [vmem:[#allocation4 + $0x50] sm:$0xff]   ;;  %v82_v33 = vshrl.u32 %v81_v32, 7  ;;  %v802_v58 = vmov 0.0   ;;  %vm803_vm0 = vmmov 0  }
  0x3c   :  { %671 = vset.pattern.permute.xlu0 %v801_v7  ;;  %v699_v16 = vld [vmem:[#allocation4] sm:$0xff]   ;;  %607 = vmatprep.subr.bf16.mxu1 %v698_v15  ;;  %v701_v20 = vld [vmem:[#allocation4 + $0x8] sm:$0xff]   ;;  %v695_v23 = vld [vmem:[#allocation2 + $0x74] ss:$8 sps:$4 sm:$0xff]  }
  0x3d   :  { %87 = vperm.xlu0 %671, %v74_v2   ;;  %v692_v19 = vld [vmem:[#allocation2 + $0x64] ss:$8 sps:$4 sm:$0xff]   ;;  %608 = vmatpush3.bf16.msra.mxu1 %v699_v16  ;;  %v694_v21 = vld [vmem:[#allocation2 + $0x60] ss:$8 sps:$4 sm:$0xff]   ;;  %v703_v24 = vld [vmem:[#allocation4 + $0x10] sm:$0xff]   ;;  %v83_v34 = vsub.s32 0, %v82_v33 }
  0x3e   :  { %227 = vmatpush1.bf16.msra.mxu0 %v679_v6  ;;  %609 = vmatprep.subr.bf16.mxu1 %v700_v17  ;;  %v704_v25 = vld [vmem:[#allocation4 + $0x58] sm:$0xff]   ;;  %v706_v28 = vld [vmem:[#allocation4 + $0x60] sm:$0xff]   ;;  %v708_v30 = vld [vmem:[#allocation4 + $0x68] sm:$0xff]   ;;  %v92_v35 = vsub.s32 1, %v82_v33  ;;  %v102_v36 = vsub.s32 2, %v82_v33 }
  0x3f   :  { %228 = vmatprep.subr.bf16.mxu0 %v680_v8  ;;  %v697_v26 = vld [vmem:[#allocation2 + $0x70] ss:$8 sps:$4 sm:$0xff]   ;;  %v707_v29 = vld [vmem:[#allocation4 + $0x20] sm:$0xff]   ;;  %v709_v31 = vld [vmem:[#allocation4 + $0x28] sm:$0xff]  }
  0x40   :  { %v705_v27 = vld [vmem:[#allocation4 + $0x18] sm:$0xff]   ;;  %v75_v37 = vld [vmem:[%s918_s1] sm:$0x7]  ;;  %v710_v53 = vld [vmem:[#allocation4 + $0x70] sm:$0xff]  }
  0x41   :  { %673 = vset.pattern.permute.xlu0 %v800_v1  ;;  %610 = vmatpush3.bf16.msra.mxu1 %v701_v20  ;;  %v84_v39 = vrot.slane %v75_v37, %v83_v34  ;;  %v93_v40 = vrot.slane %v75_v37, %v92_v35  ;;  %v103_v41 = vrot.slane %v75_v37, %v102_v36  ;;  %v564_v48 = vld [vmem:[%s919_s2] ss:$0 sm:$0xff]  ;;  %v711_v54 = vld [vmem:[#allocation4 + $0x30] sm:$0xff]   ;;  %v712_v55 = vld [vmem:[#allocation4 + $0x78] sm:$0xff]  }
  0x42   :  { %229 = vmatpush1.bf16.msra.mxu0 %v682_v9  ;;  %611 = vmatprep.subr.bf16.mxu1 %v702_v22  ;;  %v713_v56 = vld [vmem:[#allocation4 + $0x38] sm:$0xff]   ;;  %v714_v57 = vld [vmem:[#allocation6] sm:$0xff]   ;;  %v715_v59 = vld [vmem:[#allocation6 + $0x8] sm:$0xff]  }
  0x43   :  { %230 = vmatprep.subr.bf16.mxu0 %v683_v10  ;;  %v716_v60 = vld [vmem:[#allocation6 + $0x10] sm:$0xff]   ;;  %v717_v61 = vld [vmem:[#allocation6 + $0x18] sm:$0xff]   ;;  %v718_v62 = vld [vmem:[#allocation6 + $0x20] sm:$0xff]  }
  0x44   :  { %v719_v63 = vld [vmem:[#allocation6 + $0x28] sm:$0xff]   ;;  %v132_v0 = vld [vmem:[%s921_s4] sm:$0x3] }
  0x45   :  { %612 = vmatpush3.bf16.msra.mxu1 %v703_v24  ;;  %v137_v1 = vrot.slane %v132_v0, %v83_v34  ;;  %v141_v2 = vrot.slane %v132_v0, %v92_v35  ;;  %v581_v16 = vld [vmem:[%s923_s6] ss:$0 sm:$0xff] }
  0x46   :  { %231 = vmatpush1.bf16.msra.mxu0 %v685_v11  ;;  %613 = vmatprep.subr.bf16.mxu1 %v704_v25  ;;  %v598_v24 = vld [vmem:[%s925_s8] ss:$0 sm:$0xff] }
  0x47   :  { %232 = vmatprep.subr.bf16.mxu0 %v686_v12 }
  0x49   :  { %614 = vmatpush3.bf16.msra.mxu1 %v705_v27 }
  0x4a   :  { %233 = vmatpush1.bf16.msra.mxu0 %v688_v13  ;;  %615 = vmatprep.subr.bf16.mxu1 %v706_v28  ;;  %v720_v13 = vld [vmem:[#allocation6 + $0x30] sm:$0xff]  }
  0x4b   :  { %234 = vmatprep.subr.bf16.mxu0 %v689_v14  ;;  %v721_v14 = vld [vmem:[#allocation6 + $0x38] sm:$0xff]  }
  0x4d   :  { %616 = vmatpush3.bf16.msra.mxu1 %v707_v29 }
  0x4e   :  { %235 = vmatpush1.bf16.msra.mxu0 %v691_v18  ;;  %617 = vmatprep.subr.bf16.mxu1 %v708_v30 }
  0x4f   :  { %236 = vmatprep.subr.bf16.mxu0 %v692_v19 }
  0x51   :  { %618 = vmatpush3.bf16.msra.mxu1 %v709_v31 }
  0x52   :  { %237 = vmatpush1.bf16.msra.mxu0 %v694_v21  ;;  %619 = vmatprep.subr.bf16.mxu1 %v710_v53 }
  0x53   :  { %238 = vmatprep.subr.bf16.mxu0 %v695_v23 }
  0x55   :  { %620 = vmatpush3.bf16.msra.mxu1 %v711_v54 }
  0x56   :  { %239 = vmatpush1.bf16.msra.mxu0 %v697_v26  ;;  %621 = vmatprep.subr.bf16.mxu1 %v712_v55 }
  0x57   :  { %638 = vmatprep.subr.bf16.mxu0 %v802_v58 }
  0x59   :  { %622 = vmatpush3.bf16.msra.mxu1 %v713_v56 }
  0xb7   :  { %v79_v38 = vpop.permute.xlu0 %78 }
  0xb8   :  { %v98_v42 = vpop.permute.xlu1 %97  ;;  %v85_v44 = vmul.f32 %v84_v39, %v79_v38 }
  0xb9   :  { %v104_v46 = vmul.f32 %v103_v41, %v98_v42 }
  0xbc   :  { %v88_v43 = vpop.permute.xlu0 %87 }
  0xbd   :  { %v94_v45 = vmul.f32 %v93_v40, %v88_v43 }
  0xbf   :  { %v95_v47 = vadd.f32 %v94_v45, %v85_v44 }
  0xc1   :  { %v105_v49 = vadd.f32 %v104_v46, %v95_v47 }
  0xc3   :  { %v113_v50 = vadd.f32 %v564_v48, %v105_v49 }
  0xc5   :  { %v114_v51 = vmax.f32 %v113_v50, 0.0 }
  0xc7   :  { %v115_v52 = vpack.c.bf16 %v114_v51, %v114_v51 }
  0xc9   :  { %257 = vmatmul.mubr.bf16.vlgmr.msra.gmra.mrb[0].mxu0 %v115_v52 }
  0xca   :  { %639 = vmatpush3.bf16.msra.mxu0 %v714_v57  ;;  %654 = vmatprep.mubr.msk.bf16.mxu0 %vm803_vm0, %v802_v58 }
  0xcb   :  { %640 = vmatprep.subr.bf16.mxu0 %v802_v58 }
  0xce   :  { %641 = vmatpush3.bf16.msra.mxu0 %v715_v59 }
  0xcf   :  { %642 = vmatprep.subr.bf16.mxu0 %v802_v58 }
  0xd2   :  { %643 = vmatpush3.bf16.msra.mxu0 %v716_v60 }
  0xd3   :  { %644 = vmatprep.subr.bf16.mxu0 %v802_v58 }
  0xd6   :  { %645 = vmatpush3.bf16.msra.mxu0 %v717_v61 }
  0xd7   :  { %646 = vmatprep.subr.bf16.mxu0 %v802_v58 }
  0xda   :  { %647 = vmatpush3.bf16.msra.mxu0 %v718_v62 }
  0xdb   :  { %648 = vmatprep.subr.bf16.mxu0 %v802_v58 }
  0xde   :  { %649 = vmatpush3.bf16.msra.mxu0 %v719_v63 }
  0xdf   :  { %650 = vmatprep.subr.bf16.mxu0 %v802_v58 }
  0xe2   :  { %651 = vmatpush3.bf16.msra.mxu0 %v720_v13 }
  0xe3   :  { %652 = vmatprep.subr.bf16.mxu0 %v802_v58 }
  0xe6   :  { %653 = vmatpush3.bf16.msra.mxu0 %v721_v14 }
 0x19c   :  { %v258_v3 = vpop.f32.mrb[0].mxu0 }
 0x19d   :  { %v259_v4 = vadd.f32 %v258_v3, %v137_v1  ;;  %v260_v5 = vpop.f32.mrb[1].mxu0 }
 0x19e   :  { %v261_v6 = vadd.f32 %v260_v5, %v141_v2  ;;  %v262_v7 = vpop.f32.mrb[2].mxu0 }
 0x19f   :  { %v265_v8 = vmax.f32 %v259_v4, 0.0  ;;  %v263_v9 = vpop.f32.mrb[3].mxu0 }
 0x1a0   :  { %v266_v10 = vmax.f32 %v261_v6, 0.0 }
 0x1a1   :  { %v267_v12 = vpack.c.bf16 %v265_v8, %v265_v8 }
 0x1a2   :  { %v268_v11 = vpack.c.bf16 %v266_v10, %v266_v10 }
 0x1a4   :  { %436 = vmatprep.mubr.bf16.mxu1 %v268_v11 }
 0x1a5   :  { %437 = vmatmul.mubr.bf16.vlgmr.msra.gmra.mrb[0].mxu1 %v267_v12 }
 0x278   :  { %v623_v15 = vpop.f32.mrb[0].mxu1 }
 0x279   :  { %v624_v17 = vpop.f32.mrb[1].mxu1 }
 0x27a   :  { %v625_v18 = vadd.f32 %v624_v17, %v623_v15  ;;  %v626_v19 = vpop.f32.mrb[2].mxu1 }
 0x27b   :  { %v627_v20 = vpop.f32.mrb[3].mxu1 }
 0x27c   :  { %v439_v21 = vadd.f32 %v625_v18, %v581_v16 }
 0x27e   :  { %v444_v22 = vmax.f32 %v439_v21, 0.0 }
 0x280   :  { %v445_v23 = vpack.c.bf16 %v444_v22, %v444_v22 }
 0x282   :  { %655 = vmatmul.mubr.bf16.vlgmr.msra.gmra.mrb[4].mxu0 %v445_v23 }
 0x355   :  { %v551_v25 = vpop.f32.mrb[4].mxu0 }
 0x356   :  { %v552_v26 = vadd.f32 %v598_v24, %v551_v25  ;;  %v656_v27 = vpop.f32.mrb[5].mxu0 }
 0x357   :  { %v554_v28 = vpop.f32.mrb[6].mxu0 }
 0x358   :  { %557 = vst [vmem:[%s926_s9] sm:$0xff] %v552_v26  ;;  %v657_v29 = vpop.f32.mrb[7].mxu0 }
 0x359   :  { %562 = vsyncpa [#allocation3], 1 }
 0x35a   :  { %563 = vsyncpa [#allocation5], 1 }

</bundles_post_ra>
